<compile_context>
chip_gen: v6e
topology: v6e:2x2x1
jax: 0.10.0
libtpu: 0.0.40
codegen_flags: <defaults>
</compile_context>

<pallas_src>
import functools

import jax
import jax.numpy as jnp
import numpy as np
from jax.experimental import pallas as pl
from jax.experimental.pallas import tpu as pltpu


# ----------------------------------------------------------------------------
# Stage 1 kernel: conv1 (MXU) + conv2 (MXU, bf16) + per-cloud max accumulator.
# Grid = (S chunk-splits [parallel], B/TC cloud groups [parallel],
#         chunks-per-split [arbitrary / reduction]).
# ----------------------------------------------------------------------------
def conv_max_kernel(x_ref, w1_ref, b1_ref, w2_ref, b2_ref, out_ref, *, tc, tn):
    # x_ref:   (TC*TN, 3)   f32   TC clouds x TN points, channels-last
    # w1_ref:  (3, 64)      f32
    # b1_ref:  (1, 64)      f32
    # w2_ref:  (64, 128)    bf16
    # b2_ref:  (1, 128)     f32
    # out_ref: (1, TC, 128) f32   per-cloud running max (resident across chunks)
    x = x_ref[...]

    # conv1 (1x1, 3->64) + relu.  K=3 on the MXU: depth waste is free (conv2
    # leaves the MXU mostly idle) and it avoids lane broadcasts / extra VPU work.
    h1 = jnp.dot(x, w1_ref[...], preferred_element_type=jnp.float32) + b1_ref[...]
    h1 = jnp.maximum(h1, 0.0)                                        # (R, 64)  f32

    # conv2 (1x1, 64->128): bf16 inputs on the MXU, f32 accumulation; f32 epilogue.
    h2 = jnp.dot(h1.astype(jnp.bfloat16), w2_ref[...],
                 preferred_element_type=jnp.float32) + b2_ref[...]
    h2 = jnp.maximum(h2, 0.0)                                        # (R, 128) f32, >= 0

    # torch.max(x, dim=2)[0] for this block: free leading-dim split (128-lane
    # axis stays last) + sublane max per cloud.
    cmax = jnp.max(h2.reshape(tc, tn, 128), axis=1)                  # (TC, 128)

    # Running max across point chunks.  Zero init is exact because h2 >= 0
    # after relu (documented invariant).
    @pl.when(pl.program_id(2) == 0)
    def _():
        out_ref[...] = jnp.zeros_like(out_ref)

    out_ref[...] = jnp.maximum(out_ref[...], cmax[None, :, :])


# ----------------------------------------------------------------------------
# Stage 2 kernel: fc1 + segment max pool + fc2 + fc3, tiled over B chunks.
# ----------------------------------------------------------------------------
def head_kernel(feats_ref, batch_ref, w3_ref, b3_ref, w4_ref, b4_ref,
                w5_ref, b5_ref, out_ref, pooled_scr, *, num_graphs):
    # feats_ref: (TB, 128) per-cloud max features; batch_ref: (TB, 1) int32 ids
    # pooled_scr: (G, 256) f32 running segment max (persists across grid steps)
    step = pl.program_id(0)

    @pl.when(step == 0)
    def _():
        pooled_scr[...] = jnp.zeros_like(pooled_scr)

    f1 = jnp.maximum(
        jnp.dot(feats_ref[...], w3_ref[...],
                preferred_element_type=jnp.float32) + b3_ref[...], 0.0)   # (TB, 256)

    gid = batch_ref[...]                                                  # (TB, 1)
    # Segment (graph) max for this chunk.  G is small & static -> unrolled
    # masked max.  Fill value 0.0 is exact (f1 >= 0 after relu); every graph id
    # in [0, num_graphs) is assumed to have at least one cloud.
    rows = []
    for g in range(num_graphs):
        rows.append(jnp.max(jnp.where(gid == g, f1, 0.0), axis=0, keepdims=True))
    chunk_pooled = jnp.concatenate(rows, axis=0)                          # (G, 256)
    pooled_scr[...] = jnp.maximum(pooled_scr[...], chunk_pooled)

    @pl.when(step == pl.num_programs(0) - 1)
    def _():
        h = jnp.dot(pooled_scr[...], w4_ref[...],
                    preferred_element_type=jnp.float32) + b4_ref[...]     # (G, 32)
        out_ref[...] = (jnp.dot(h, w5_ref[...],
                                preferred_element_type=jnp.float32)
                        + b5_ref[...])                                    # (G, 1)


# ----------------------------------------------------------------------------
# Tiling helpers.
# ----------------------------------------------------------------------------
def _largest_mult8_divisor(n, target):
    """n if n <= target, else the largest multiple-of-8 divisor of n <= target."""
    if n <= target:
        return n
    best = None
    for t in range(8, target + 1, 8):
        if n % t == 0:
            best = t
    return best if best is not None else n


def _stage1_tiling(B, N, target_rows):
    """Pick (TC clouds, TN points) per grid step so TC*TN ~ target_rows."""
    if N >= target_rows:
        return 1, _largest_mult8_divisor(N, target_rows)
    tc = 1
    for t in range(1, B + 1):
        if B % t == 0 and t * N <= target_rows:
            tc = t
    return tc, N


# ----------------------------------------------------------------------------
# Wrapper: layout glue + the two pallas_calls.
# ----------------------------------------------------------------------------
def pointnet_forward(x, batch, params, num_graphs, *, channels_last=False,
                     target_rows=2048):
    """PointNet forward.

    x: (B, 3, N) float32 (PyTorch Conv1d NCL layout) by default, or (B, N, 3)
       when channels_last=True (preferred — skips one wrapper HBM transpose
       pass over the only large tensor).
    batch: (B,) int32 graph ids in [0, num_graphs); every graph non-empty.
    """
    w1, b1, w2, b2, w3, b3, w4, b4, w5, b5 = params
    if channels_last:
        B, N, C = x.shape
        x_flat = x.reshape(B * N, C)                      # free reshape, no HBM pass
    else:
        B, C, N = x.shape
        # One extra HBM read+write; supply channels-last data upstream to avoid it.
        x_flat = jnp.transpose(x, (0, 2, 1)).reshape(B * N, C)
    assert C == 3
    # TODO(synk): pad N up to a multiple of 8 (replicating a real point, so the
    # padding never wins the max) for odd N.
    assert N % 8 == 0, "N (points per cloud) must be a multiple of 8"
    G = num_graphs

    TC, TN = _stage1_tiling(B, N, target_rows)
    R = TC * TN
    n_chunks = N // TN
    # Optional split of the chunk axis so small-B / big-N still feeds 2 TCs (v7x).
    S = 2 if (B // TC == 1 and n_chunks >= 2 and n_chunks % 2 == 0) else 1
    cps = n_chunks // S

    w2_bf = w2.astype(jnp.bfloat16)

    # ---- stage 1: conv1 + conv2 + per-cloud max ----
    stage1 = functools.partial(conv_max_kernel, tc=TC, tn=TN)
    feats_s = pl.pallas_call(
        stage1,
        out_shape=jax.ShapeDtypeStruct((S, B, 128), jnp.float32),
        grid=(S, B // TC, cps),
        in_specs=[
            pl.BlockSpec((R, 3), lambda s, i, j: (i * n_chunks + s * cps + j, 0)),
            pl.BlockSpec((3, 64), lambda s, i, j: (0, 0)),
            pl.BlockSpec((1, 64), lambda s, i, j: (0, 0)),
            pl.BlockSpec((64, 128), lambda s, i, j: (0, 0)),
            pl.BlockSpec((1, 128), lambda s, i, j: (0, 0)),
        ],
        out_specs=pl.BlockSpec((1, TC, 128), lambda s, i, j: (s, i, 0)),
        compiler_params=pltpu.CompilerParams(
            dimension_semantics=("parallel", "parallel", "arbitrary")),
    )(x_flat, w1, b1, w2_bf, b2)
    feats = feats_s[0] if S == 1 else jnp.max(feats_s, axis=0)        # (B, 128)

    # ---- stage 2: fc1 + global_max_pool + fc2 + fc3, tiled over B ----
    TB = _largest_mult8_divisor(B, 1024)
    batch_col = batch.astype(jnp.int32).reshape(B, 1)
    head = functools.partial(head_kernel, num_graphs=G)
    out = pl.pallas_call(
        head,
        out_shape=jax.ShapeDtypeStruct((G, 1), jnp.float32),
        grid=(B // TB,),
        in_specs=[
            pl.BlockSpec((TB, 128), lambda i: (i, 0)),
            pl.BlockSpec((TB, 1), lambda i: (i, 0)),
            pl.BlockSpec((128, 256), lambda i: (0, 0)),
            pl.BlockSpec((1, 256), lambda i: (0, 0)),
            pl.BlockSpec((256, 32), lambda i: (0, 0)),
            pl.BlockSpec((1, 32), lambda i: (0, 0)),
            pl.BlockSpec((32, 1), lambda i: (0, 0)),
            pl.BlockSpec((1, 1), lambda i: (0, 0)),
        ],
        out_specs=pl.BlockSpec((G, 1), lambda i: (0, 0)),
        scratch_shapes=[pltpu.VMEM((G, 256), jnp.float32)],
        compiler_params=pltpu.CompilerParams(
            dimension_semantics=("arbitrary",)),
    )(feats, batch_col, w3, b3, w4, b4, w5, b5)
    return out


# ----------------------------------------------------------------------------
# Deterministic parameter init (shapes from PointNet.__init__; stored
# pre-transposed so every layer is  y = x @ W + b).
# ----------------------------------------------------------------------------
def init_params(key):
    dims = [(3, 64), (64, 128), (128, 256), (256, 32), (32, 1)]
    keys = jax.random.split(key, 2 * len(dims))
    params = []
    for i, (fin, fout) in enumerate(dims):
        w = jax.random.normal(keys[2 * i], (fin, fout), jnp.float32) / jnp.sqrt(fin)
        b = 0.1 * jax.random.normal(keys[2 * i + 1], (1, fout), jnp.float32)
        params += [w, b]
    return tuple(params)


# ----------------------------------------------------------------------------
# Pure-JAX f32 reference of the PyTorch forward (for verification).
# ----------------------------------------------------------------------------
def pointnet_ref(x_ncl, batch, params, num_graphs):
    w1, b1, w2, b2, w3, b3, w4, b4, w5, b5 = params
    x = jnp.transpose(x_ncl, (0, 2, 1))                              # (B, N, 3)
    h1 = jax.nn.relu(jnp.einsum("bnc,cd->bnd", x, w1) + b1)
    h2 = jax.nn.relu(jnp.einsum("bnc,cd->bnd", h1, w2) + b2)
    m = jnp.max(h2, axis=1)                                          # (B, 128)
    f1 = jax.nn.relu(m @ w3 + b3)                                    # (B, 256)
    pooled = jnp.stack([
        jnp.max(jnp.where((batch == g)[:, None], f1, -jnp.inf), axis=0)
        for g in range(num_graphs)])                                 # (G, 256)
    return (pooled @ w4 + b4) @ w5 + b5                              # (G, 1)


if __name__ == "__main__":
    key = jax.random.PRNGKey(0)
    kx, kp = jax.random.split(key, 2)

    B, N = 8, 16          # 8 point clouds, 16 points each, 3 coords
    G = 2                 # 2 graphs (global_max_pool groups)
    x_ncl = jax.random.normal(kx, (B, 3, N), jnp.float32)            # NCL, as PyTorch
    batch = jnp.array([0, 0, 0, 0, 1, 1, 1, 1], dtype=jnp.int32)
    params = init_params(kp)

    ref = pointnet_ref(x_ncl, batch, params, G)

    # Default path: NCL input, matches the PyTorch module signature.
    out = jax.block_until_ready(pointnet_forward(x_ncl, batch, params, G))
    assert out.shape == (G, 1)
    # conv2 runs in bf16 (f32 accumulation) -> relaxed tolerance vs f32 reference.
    np.testing.assert_allclose(np.asarray(out), np.asarray(ref),
                               rtol=5e-2, atol=5e-2)

    # Channels-last fast path (skips the wrapper NCL->NLC HBM pass).
    x_nlc = jnp.transpose(x_ncl, (0, 2, 1))
    out2 = jax.block_until_ready(
        pointnet_forward(x_nlc, batch, params, G, channels_last=True))
    np.testing.assert_allclose(np.asarray(out2), np.asarray(ref),
                               rtol=5e-2, atol=5e-2)

    print("KERNEL_OK")
</pallas_src>

<mosaic_0001>
module attributes {stable_mosaic.version = 11 : i64} {
  func.func @conv_max_kernel(%arg0: i32, %arg1: i32, %arg2: i32, %arg3: memref<128x3xf32, #tpu.memory_space<vmem>>, %arg4: memref<3x64xf32, #tpu.memory_space<vmem>>, %arg5: memref<1x64xf32, #tpu.memory_space<vmem>>, %arg6: memref<64x128xbf16, #tpu.memory_space<vmem>>, %arg7: memref<1x128xf32, #tpu.memory_space<vmem>>, %arg8: memref<1x8x128xf32, #tpu.memory_space<vmem>>) attributes {dimension_semantics = [#tpu.dimension_semantics<parallel>, #tpu.dimension_semantics<parallel>, #tpu.dimension_semantics<arbitrary>], iteration_bounds = array<i64: 1, 1, 1>, scalar_prefetch = 0 : i64, scratch_operands = 0 : i64, tpu.core_type = #tpu.core_type<tc>, window_params = [{transform_indices = @transform_0, window_bounds = array<i64: 128, 3>}, {pipeline_mode = #tpu.pipeline_mode<synchronous>, transform_indices = @transform_1, window_bounds = array<i64: 3, 64>}, {pipeline_mode = #tpu.pipeline_mode<synchronous>, transform_indices = @transform_2, window_bounds = array<i64: 1, 64>}, {pipeline_mode = #tpu.pipeline_mode<synchronous>, transform_indices = @transform_3, window_bounds = array<i64: 64, 128>}, {pipeline_mode = #tpu.pipeline_mode<synchronous>, transform_indices = @transform_4, window_bounds = array<i64: 1, 128>}, {transform_indices = @transform_5, window_bounds = array<i64: 1, 8, 128>}]} {
    %c0 = arith.constant 0 : index
    %c0_0 = arith.constant 0 : index
    %0 = vector.load %arg3[%c0, %c0_0] : memref<128x3xf32, #tpu.memory_space<vmem>>, vector<128x3xf32>
    %c0_1 = arith.constant 0 : index
    %c0_2 = arith.constant 0 : index
    %1 = vector.load %arg4[%c0_1, %c0_2] : memref<3x64xf32, #tpu.memory_space<vmem>>, vector<3x64xf32>
    %cst = arith.constant dense<0.000000e+00> : vector<128x64xf32>
    %2 = tpu.matmul %0, %1, %cst {dimension_numbers = #tpu.dot_dimension_numbers<[1], [0], [0], [1], [0, 0, 1, 1], [], []>} : vector<128x3xf32>, vector<3x64xf32>, vector<128x64xf32> -> vector<128x64xf32>
    %c0_3 = arith.constant 0 : index
    %c0_4 = arith.constant 0 : index
    %3 = vector.load %arg5[%c0_3, %c0_4] : memref<1x64xf32, #tpu.memory_space<vmem>>, vector<1x64xf32>
    %4 = vector.broadcast %3 : vector<1x64xf32> to vector<128x64xf32>
    %5 = arith.addf %2, %4 : vector<128x64xf32>
    %cst_5 = arith.constant 0.000000e+00 : f32
    %6 = vector.broadcast %cst_5 : f32 to vector<128x64xf32>
    %7 = arith.maximumf %5, %6 : vector<128x64xf32>
    %8 = arith.truncf %7 : vector<128x64xf32> to vector<128x64xbf16>
    %c0_6 = arith.constant 0 : index
    %c0_7 = arith.constant 0 : index
    %9 = vector.load %arg6[%c0_6, %c0_7] : memref<64x128xbf16, #tpu.memory_space<vmem>>, vector<64x128xbf16>
    %cst_8 = arith.constant dense<0.000000e+00> : vector<128x128xf32>
    %10 = tpu.matmul %8, %9, %cst_8 {dimension_numbers = #tpu.dot_dimension_numbers<[1], [0], [0], [1], [0, 0, 1, 1], [], []>} : vector<128x64xbf16>, vector<64x128xbf16>, vector<128x128xf32> -> vector<128x128xf32>
    %c0_9 = arith.constant 0 : index
    %c0_10 = arith.constant 0 : index
    %11 = vector.load %arg7[%c0_9, %c0_10] : memref<1x128xf32, #tpu.memory_space<vmem>>, vector<1x128xf32>
    %12 = vector.broadcast %11 : vector<1x128xf32> to vector<128x128xf32>
    %13 = arith.addf %10, %12 : vector<128x128xf32>
    %cst_11 = arith.constant 0.000000e+00 : f32
    %14 = vector.broadcast %cst_11 : f32 to vector<128x128xf32>
    %15 = arith.maximumf %13, %14 : vector<128x128xf32>
    %16 = vector.shape_cast %15 : vector<128x128xf32> to vector<8x16x128xf32>
    %cst_12 = arith.constant dense<0xFF800000> : vector<8x128xf32>
    %17 = vector.multi_reduction <maximumf>, %16, %cst_12 [1] : vector<8x16x128xf32> to vector<8x128xf32>
    %c0_i32 = arith.constant 0 : i32
    %18 = arith.cmpi eq, %arg2, %c0_i32 : i32
    %19 = arith.extui %18 : i1 to i32
    %c0_i32_13 = arith.constant 0 : i32
    %20 = arith.cmpi ne, %19, %c0_i32_13 : i32
    scf.if %20 {
      %cst_20 = arith.constant 0.000000e+00 : f32
      %25 = vector.broadcast %cst_20 : f32 to vector<1x8x128xf32>
      %c0_21 = arith.constant 0 : index
      %c0_22 = arith.constant 0 : index
      %c0_23 = arith.constant 0 : index
      %26 = vector.load %arg8[%c0_21, %c0_22, %c0_23] : memref<1x8x128xf32, #tpu.memory_space<vmem>>, vector<1x8x128xf32>
      tpu.vector_store %arg8[%c0_21, %c0_22, %c0_23], %25 {strides = array<i32>} : memref<1x8x128xf32, #tpu.memory_space<vmem>>, vector<1x8x128xf32>,
    } else {
    }
    %c0_14 = arith.constant 0 : index
    %c0_15 = arith.constant 0 : index
    %c0_16 = arith.constant 0 : index
    %21 = vector.load %arg8[%c0_14, %c0_15, %c0_16] : memref<1x8x128xf32, #tpu.memory_space<vmem>>, vector<1x8x128xf32>
    %22 = vector.shape_cast %17 : vector<8x128xf32> to vector<1x8x128xf32>
    %23 = arith.maximumf %21, %22 : vector<1x8x128xf32>
    %c0_17 = arith.constant 0 : index
    %c0_18 = arith.constant 0 : index
    %c0_19 = arith.constant 0 : index
    %24 = vector.load %arg8[%c0_17, %c0_18, %c0_19] : memref<1x8x128xf32, #tpu.memory_space<vmem>>, vector<1x8x128xf32>
    tpu.vector_store %arg8[%c0_17, %c0_18, %c0_19], %23 {strides = array<i32>} : memref<1x8x128xf32, #tpu.memory_space<vmem>>, vector<1x8x128xf32>,
    return
  }
  func.func @transform_0(%arg0: i32, %arg1: i32, %arg2: i32) -> (i32, i32) {
    %c1_i32 = arith.constant 1 : i32
    %0 = arith.muli %arg1, %c1_i32 : i32
    %c1_i32_0 = arith.constant 1 : i32
    %1 = arith.muli %arg0, %c1_i32_0 : i32
    %2 = arith.addi %0, %1 : i32
    %3 = arith.addi %2, %arg2 : i32
    %c0_i32 = arith.constant 0 : i32
    %c0_i32_1 = arith.constant 0 : i32
    return %3, %c0_i32 : i32, i32
  }
  func.func @transform_1(%arg0: i32, %arg1: i32, %arg2: i32) -> (i32, i32) {
    %c0_i32 = arith.constant 0 : i32
    %c0_i32_0 = arith.constant 0 : i32
    %c0_i32_1 = arith.constant 0 : i32
    return %c0_i32, %c0_i32_0 : i32, i32
  }
  func.func @transform_2(%arg0: i32, %arg1: i32, %arg2: i32) -> (i32, i32) {
    %c0_i32 = arith.constant 0 : i32
    %c0_i32_0 = arith.constant 0 : i32
    %c0_i32_1 = arith.constant 0 : i32
    return %c0_i32, %c0_i32_0 : i32, i32
  }
  func.func @transform_3(%arg0: i32, %arg1: i32, %arg2: i32) -> (i32, i32) {
    %c0_i32 = arith.constant 0 : i32
    %c0_i32_0 = arith.constant 0 : i32
    %c0_i32_1 = arith.constant 0 : i32
    return %c0_i32, %c0_i32_0 : i32, i32
  }
  func.func @transform_4(%arg0: i32, %arg1: i32, %arg2: i32) -> (i32, i32) {
    %c0_i32 = arith.constant 0 : i32
    %c0_i32_0 = arith.constant 0 : i32
    %c0_i32_1 = arith.constant 0 : i32
    return %c0_i32, %c0_i32_0 : i32, i32
  }
  func.func @transform_5(%arg0: i32, %arg1: i32, %arg2: i32) -> (i32, i32, i32) {
    %c0_i32 = arith.constant 0 : i32
    %c0_i32_0 = arith.constant 0 : i32
    return %arg0, %arg1, %c0_i32 : i32, i32, i32
  }
}

</mosaic_0001>

<bundles_post_ra>
// kernel: tpu_custom_call.1
= control target key start
LH: loop header
LB: loop body
LE: loop exit
PB: predicated region body
PF: predicated region fallthrough
CT: control target
= control target key end

     0   :  { %vm122_vm0 = vcmask 1042432   ;;  %vm73_vm1 = vcmask 23552   ;;  %s862_s0 = inlined_call_operand.vmem [shape: f32[128,3], index: 0, kind: input, shape index: {}]   ;;  %s863_s1 = inlined_call_operand.vmem [shape: f32[3,64], index: 1, kind: input, shape index: {}]   ;;  %s864_s2 = inlined_call_operand.vmem [shape: f32[1,64], index: 2, kind: input, shape index: {}]   ;;  %s865_s3 = inlined_call_operand.vmem [shape: bf16[64,128], index: 3, kind: input, shape index: {}]   ;;  %s866_s4 = inlined_call_operand.vmem [shape: f32[1,128], index: 4, kind: input, shape index: {}]   ;;  %s867_s5 = inlined_call_operand.hbm [shape: f32[1,8,128], index: 5, kind: output, shape index: {}]  }
   0x1   :  { %v65_v0 = vld [vmem:[%s863_s1] sm:$0x7]  ;;  %v50_v2 = vld [vmem:[%s862_s0 + $0x8] sm:$0xff]  ;;  %v51_v3 = vld [vmem:[%s862_s0 + $0x10] sm:$0xff] }
   0x2   :  { %v49_v1 = vld [vmem:[%s862_s0] sm:$0xff]  ;;  %639 = vmatprep.subr.msk.mxu0 %vm122_vm0, %v65_v0  ;;  %v52_v4 = vld [vmem:[%s862_s0 + $0x18] sm:$0xff]  ;;  %v54_v6 = vld [vmem:[%s862_s0 + $0x28] sm:$0xff] }
   0x3   :  { %641 = vmatprep.mubr.msk.f32.mxu0 %vm73_vm1, %v49_v1  ;;  %640 = vmatpush3.msk.msra.mxu0 %vm122_vm0, %v65_v0  ;;  %v53_v5 = vld [vmem:[%s862_s0 + $0x20] sm:$0xff]  ;;  %v691_v7 = vld [vmem:[%s865_s3 + $0x18] sm:$0xff]  }
   0x4   :  { %642 = vmatmul.mubr.msk.f32.vlgmr.msra.gmra.mxu0 %vm73_vm1, %v50_v2  ;;  %665 = vmatprep.subr.bf16.mxu1 %v691_v7 }
   0x5   :  { %644 = vmatprep.mubr.msk.f32.mxu0 %vm73_vm1, %v51_v3 }
   0x8   :  { %645 = vmatmul.mubr.msk.f32.gmra.mxu0 %vm73_vm1, %v52_v4 }
   0x9   :  { %647 = vmatprep.mubr.msk.f32.mxu0 %vm73_vm1, %v53_v5 }
   0xa   :  { %10 = vsyncpa [#allocation3], 0  ;;  %v55_v8 = vld [vmem:[%s862_s0 + $0x30] sm:$0xff]  ;;  %666 = vmatpush3.bf16.msra.mxu1 %v691_v7  ;;  %v56_v9 = vld [vmem:[%s862_s0 + $0x38] sm:$0xff]  ;;  %vm334_vm2 = vcmask 523264   ;;  %vm542_vm3 = vcmask 1041409  }
   0xb   :  { %v57_v10 = vld [vmem:[%s862_s0 + $0x40] sm:$0xff]  ;;  %v58_v11 = vld [vmem:[%s862_s0 + $0x48] sm:$0xff]  ;;  %v59_v12 = vld [vmem:[%s862_s0 + $0x50] sm:$0xff]  ;;  %vm544_vm4 = vcmask 1042434   ;;  %vm546_vm5 = vcmask 1043459   ;;  %vm548_vm6 = vcmask 1044484  }
   0xc   :  { %648 = vmatmul.mubr.msk.f32.gmra.mxu0 %vm73_vm1, %v54_v6  ;;  %v60_v13 = vld [vmem:[%s862_s0 + $0x58] sm:$0xff]  ;;  %v61_v14 = vld [vmem:[%s862_s0 + $0x60] sm:$0xff]  ;;  %v62_v15 = vld [vmem:[%s862_s0 + $0x68] sm:$0xff]  ;;  %vm550_vm7 = vcmask 1045509   ;;  %vm552_vm8 = vcmask 1046534   ;;  %vm554_vm9 = vcmask 1047559  }
   0xd   :  { %650 = vmatprep.mubr.msk.f32.mxu0 %vm73_vm1, %v55_v8  ;;  %v63_v16 = vld [vmem:[%s862_s0 + $0x70] sm:$0xff]  ;;  %v64_v17 = vld [vmem:[%s862_s0 + $0x78] sm:$0xff]  ;;  %v693_v19 = vld [vmem:[%s865_s3 + $0x8] sm:$0xff]  }
   0xe   :  { %v692_v18 = vld [vmem:[%s865_s3 + $0x10] sm:$0xff]   ;;  %v694_v20 = vld [vmem:[%s865_s3] sm:$0xff]  }
   0xf   :  { %667 = vmatprep.subr.bf16.mxu1 %v692_v18  ;;  %v579_v21 = vld [vmem:[%s864_s2] ss:$0 sm:$0xff] }
  0x10   :  { %651 = vmatmul.mubr.msk.f32.gmra.mxu0 %vm73_vm1, %v56_v9  ;;  %668 = vmatpush3.bf16.msra.mxu1 %v692_v18 }
  0x11   :  { %653 = vmatprep.mubr.msk.f32.mxu0 %vm73_vm1, %v57_v10  ;;  %669 = vmatprep.subr.bf16.mxu1 %v693_v19 }
  0x14   :  { %654 = vmatmul.mubr.msk.f32.gmra.mxu0 %vm73_vm1, %v58_v11  ;;  %670 = vmatpush3.bf16.msra.mxu1 %v693_v19 }
  0x15   :  { %656 = vmatprep.mubr.msk.f32.mxu0 %vm73_vm1, %v59_v12  ;;  %671 = vmatprep.subr.bf16.mxu1 %v694_v20 }
  0x18   :  { %657 = vmatmul.mubr.msk.f32.gmra.mxu0 %vm73_vm1, %v60_v13  ;;  %672 = vmatpush3.bf16.msra.mxu1 %v694_v20 }
  0x19   :  { %659 = vmatprep.mubr.msk.f32.mxu0 %vm73_vm1, %v61_v14 }
  0x1c   :  { %660 = vmatmul.mubr.msk.f32.gmra.mxu0 %vm73_vm1, %v62_v15 }
  0x1d   :  { %662 = vmatprep.mubr.msk.f32.mxu0 %vm73_vm1, %v63_v16 }
  0x20   :  { %663 = vmatmul.mubr.msk.f32.gmra.mxu0 %vm73_vm1, %v64_v17  ;;  %v841_v17 = vld [vmem:[%s866_s4] ss:$0 sm:$0xff]  ;;  %s717_s4 = smov [#allocation2]  }
  0x21   :  { %s565_s9 = sshll.u32 %s717_s4, 4  ;;  %s566_s9 = int_to_ptr.vmem [resolvable:$true] %s565_s9 }
  0x22   :  { %s695_s10 = scalar_lea.vmem %s566_s9, 128  ;;  %p700_p1 = scmp.lt.s32.totalorder %s566_s9, %s566_s9 }
  0x23   :  { %p696_p0 = scmp.ne.s32.totalorder %s566_s9, %s695_s10  ;;  %p701_p2 = scmp.lt.s32.totalorder %s695_s10, %s695_s10 }
  0x25   :  { %p702_p3 = por %p701_p2, %p700_p1 }
  0x27   :  { %p703_p4 = pnand %p702_p3, %p696_p0 }
  0xc4   :  { %v643_v22 = vpop.f32.mrf.mxu0 }
  0xc5   :  { %v198_v23 = vadd.f32 %v643_v22, %v579_v21 }
  0xc6   :  { %v192_v24 = vpop.f32.mrf.mxu0 }
  0xc7   :  { %v193_v25 = vadd.f32 %v579_v21, %v192_v24  ;;  %v272_v27 = vmax.f32 %v198_v23, 0.0 }
  0xc8   :  { %v646_v26 = vpop.f32.mrf.mxu0 }
  0xc9   :  { %v271_v28 = vmax.f32 %v193_v25, 0.0  ;;  %v208_v29 = vadd.f32 %v646_v26, %v579_v21 }
  0xca   :  { %v202_v30 = vpop.f32.mrf.mxu0 }
  0xcb   :  { %v203_v31 = vadd.f32 %v579_v21, %v202_v30  ;;  %v287_v32 = vpack.c.bf16 %v272_v27, %v271_v28  ;;  %v274_v34 = vmax.f32 %v208_v29, 0.0 }
  0xcc   :  { %v649_v33 = vpop.f32.mrf.mxu0 }
  0xcd   :  { %v273_v35 = vmax.f32 %v203_v31, 0.0  ;;  %v218_v36 = vadd.f32 %v649_v33, %v579_v21  ;;  %673 = vmatprep.mubr.msk.bf16.mxu1 %vm334_vm2, %v287_v32 }
  0xce   :  { %v212_v37 = vpop.f32.mrf.mxu0 }
  0xcf   :  { %v288_v38 = vpack.c.bf16 %v274_v34, %v273_v35  ;;  %v213_v39 = vadd.f32 %v579_v21, %v212_v37  ;;  %v276_v41 = vmax.f32 %v218_v36, 0.0 }
  0xd0   :  { %v652_v40 = vpop.f32.mrf.mxu0 }
  0xd1   :  { %v275_v42 = vmax.f32 %v213_v39, 0.0  ;;  %v228_v43 = vadd.f32 %v652_v40, %v579_v21  ;;  %674 = vmatmul.mubr.msk.bf16.vlgmr.msra.gmra.mxu1 %vm334_vm2, %v288_v38 }
  0xd2   :  { %v222_v44 = vpop.f32.mrf.mxu0 }
  0xd3   :  { %v289_v45 = vpack.c.bf16 %v276_v41, %v275_v42  ;;  %v223_v46 = vadd.f32 %v579_v21, %v222_v44  ;;  %v278_v48 = vmax.f32 %v228_v43, 0.0 }
  0xd4   :  { %v655_v47 = vpop.f32.mrf.mxu0 }
  0xd5   :  { %v277_v49 = vmax.f32 %v223_v46, 0.0  ;;  %v238_v50 = vadd.f32 %v655_v47, %v579_v21  ;;  %677 = vmatprep.mubr.msk.bf16.mxu1 %vm334_vm2, %v289_v45 }
  0xd6   :  { %v232_v51 = vpop.f32.mrf.mxu0 }
  0xd7   :  { %v290_v52 = vpack.c.bf16 %v278_v48, %v277_v49  ;;  %v233_v53 = vadd.f32 %v579_v21, %v232_v51  ;;  %v280_v55 = vmax.f32 %v238_v50, 0.0 }
  0xd8   :  { %v658_v54 = vpop.f32.mrf.mxu0 }
  0xd9   :  { %v279_v56 = vmax.f32 %v233_v53, 0.0  ;;  %v248_v57 = vadd.f32 %v658_v54, %v579_v21  ;;  %678 = vmatmul.mubr.msk.bf16.gmra.mxu1 %vm334_vm2, %v290_v52 }
  0xda   :  { %v242_v58 = vpop.f32.mrf.mxu0 }
  0xdb   :  { %v291_v59 = vpack.c.bf16 %v280_v55, %v279_v56  ;;  %v243_v60 = vadd.f32 %v579_v21, %v242_v58  ;;  %v282_v62 = vmax.f32 %v248_v57, 0.0 }
  0xdc   :  { %v661_v61 = vpop.f32.mrf.mxu0 }
  0xdd   :  { %v281_v63 = vmax.f32 %v243_v60, 0.0  ;;  %v258_v0 = vadd.f32 %v661_v61, %v579_v21  ;;  %681 = vmatprep.mubr.msk.bf16.mxu1 %vm334_vm2, %v291_v59 }
  0xde   :  { %v252_v1 = vpop.f32.mrf.mxu0 }
  0xdf   :  { %v292_v2 = vpack.c.bf16 %v282_v62, %v281_v63  ;;  %v253_v3 = vadd.f32 %v579_v21, %v252_v1  ;;  %v284_v5 = vmax.f32 %v258_v0, 0.0 }
  0xe0   :  { %v664_v4 = vpop.f32.mrf.mxu0 }
  0xe1   :  { %v283_v6 = vmax.f32 %v253_v3, 0.0  ;;  %v268_v7 = vadd.f32 %v664_v4, %v579_v21  ;;  %682 = vmatmul.mubr.msk.bf16.gmra.mxu1 %vm334_vm2, %v292_v2 }
  0xe2   :  { %v262_v8 = vpop.f32.mrf.mxu0 }
  0xe3   :  { %v293_v9 = vpack.c.bf16 %v284_v5, %v283_v6  ;;  %v263_v10 = vadd.f32 %v579_v21, %v262_v8  ;;  %v286_v11 = vmax.f32 %v268_v7, 0.0 }
  0xe5   :  { %v285_v12 = vmax.f32 %v263_v10, 0.0  ;;  %685 = vmatprep.mubr.msk.bf16.mxu1 %vm334_vm2, %v293_v9 }
  0xe7   :  { %v294_v13 = vpack.c.bf16 %v286_v11, %v285_v12 }
  0xe9   :  { %686 = vmatmul.mubr.msk.bf16.gmra.mxu1 %vm334_vm2, %v294_v13 }
 0x191   :  { %v675_v14 = vpop.f32.mrf.mxu1 }
 0x192   :  { %v402_v22 = vadd.f32 %v675_v14, %v841_v17 }
 0x193   :  { %v393_v15 = vpop.f32.mrf.mxu1 }
 0x194   :  { %v394_v18 = vadd.f32 %v841_v17, %v393_v15  ;;  %v458_v28 = vmax.f32 %v402_v22, 0.0 }
 0x195   :  { %v676_v16 = vpop.f32.mrf.mxu1 }
 0x196   :  { %v405_v19 = vadd.f32 %v676_v16, %v841_v17  ;;  %v456_v25 = vmax.f32 %v394_v18, 0.0 }
 0x197   :  { %v396_v20 = vpop.f32.mrf.mxu1 }
 0x198   :  { %v397_v21 = vadd.f32 %v841_v17, %v396_v20  ;;  %v459_v26 = vmax.f32 %v405_v19, 0.0 }
 0x199   :  { %v679_v23 = vpop.f32.mrf.mxu1 }
 0x19a   :  { %v457_v24 = vmax.f32 %v397_v21, 0.0  ;;  %v418_v30 = vadd.f32 %v679_v23, %v841_v17  ;;  %v479_v34 = vmax.f32 %v458_v28, %v459_v26 }
 0x19b   :  { %v409_v27 = vpop.f32.mrf.mxu1 }
 0x19c   :  { %v472_v29 = vmax.f32 %v456_v25, %v457_v24  ;;  %v410_v32 = vadd.f32 %v841_v17, %v409_v27  ;;  %v462_v39 = vmax.f32 %v418_v30, 0.0  ;;  %v480_v43 = vrot.slane %v479_v34, 4 }
 0x19d   :  { %v680_v31 = vpop.f32.mrf.mxu1 }
 0x19e   :  { %v421_v33 = vadd.f32 %v680_v31, %v841_v17  ;;  %v473_v38 = vrot.slane %v472_v29, 4  ;;  %v460_v41 = vmax.f32 %v410_v32, 0.0  ;;  %v481_v52 = vmax.f32 %v479_v34, %v480_v43 }
 0x19f   :  { %v412_v35 = vpop.f32.mrf.mxu1 }
 0x1a0   :  { %v463_v36 = vmax.f32 %v421_v33, 0.0  ;;  %v413_v37 = vadd.f32 %v841_v17, %v412_v35  ;;  %v474_v47 = vmax.f32 %v472_v29, %v473_v38  ;;  %v482_v1 = vrot.slane %v481_v52, 2 }
 0x1a1   :  { %v683_v40 = vpop.f32.mrf.mxu1 }
 0x1a2   :  { %v461_v42 = vmax.f32 %v413_v37, 0.0  ;;  %v493_v44 = vmax.f32 %v462_v39, %v463_v36  ;;  %v434_v48 = vadd.f32 %v683_v40, %v841_v17  ;;  %v475_v58 = vrot.slane %v474_v47, 2 }
 0x1a3   :  { %v425_v45 = vpop.f32.mrf.mxu1  ;;  %v483_v13 = vmax.f32 %v481_v52, %v482_v1 }
 0x1a4   :  { %v486_v46 = vmax.f32 %v460_v41, %v461_v42  ;;  %v426_v51 = vadd.f32 %v841_v17, %v425_v45  ;;  %v494_v53 = vrot.slane %v493_v44, 4  ;;  %v466_v59 = vmax.f32 %v434_v48, 0.0 }
 0x1a5   :  { %v684_v49 = vpop.f32.mrf.mxu1  ;;  %v476_v6 = vmax.f32 %v474_v47, %v475_v58  ;;  %v484_v28 = vrot.slane %v483_v13, 1 }
 0x1a6   :  { %v487_v50 = vrot.slane %v486_v46, 4  ;;  %v437_v54 = vadd.f32 %v684_v49, %v841_v17  ;;  %v464_v63 = vmax.f32 %v426_v51, 0.0  ;;  %v495_v2 = vmax.f32 %v493_v44, %v494_v53 }
 0x1a7   :  { %v428_v55 = vpop.f32.mrf.mxu1  ;;  %v477_v21 = vrot.slane %v476_v6, 1  ;;  %v485_v38 = vmax.f32 %v483_v13, %v484_v28 }
 0x1a8   :  { %v488_v56 = vmax.f32 %v486_v46, %v487_v50  ;;  %v429_v57 = vadd.f32 %v841_v17, %v428_v55  ;;  %v467_v60 = vmax.f32 %v437_v54, 0.0  ;;  %v496_v14 = vrot.slane %v495_v2, 2 }
 0x1a9   :  { %v687_v61 = vpop.f32.mrf.mxu1  ;;  %v478_v34 = vmax.f32 %v476_v6, %v477_v21 }
 0x1aa   :  { %v489_v62 = vrot.slane %v488_v56, 2  ;;  %v465_v0 = vmax.f32 %v429_v57, 0.0  ;;  %v507_v3 = vmax.f32 %v466_v59, %v467_v60  ;;  %v450_v8 = vadd.f32 %v687_v61, %v841_v17 }
 0x1ab   :  { %v441_v4 = vpop.f32.mrf.mxu1  ;;  %v497_v29 = vmax.f32 %v495_v2, %v496_v14  ;;  %v543_v43 = vsel %vm542_vm3, %v485_v38, %v478_v34 }
 0x1ac   :  { %v500_v5 = vmax.f32 %v464_v63, %v465_v0  ;;  %v508_v7 = vrot.slane %v507_v3, 4  ;;  %v490_v10 = vmax.f32 %v488_v56, %v489_v62  ;;  %v442_v12 = vadd.f32 %v841_v17, %v441_v4 }
 0x1ad   :  { %v688_v9 = vpop.f32.mrf.mxu1  ;;  %v470_v22 = vmax.f32 %v450_v8, 0.0  ;;  %v498_v39 = vrot.slane %v497_v29, 1 }
 0x1ae   :  { %v501_v11 = vrot.slane %v500_v5, 4  ;;  %v509_v15 = vmax.f32 %v507_v3, %v508_v7  ;;  %v453_v16 = vadd.f32 %v688_v9, %v841_v17  ;;  %v491_v24 = vrot.slane %v490_v10, 1 }
 0x1af   :  { %v444_v18 = vpop.f32.mrf.mxu1  ;;  %v468_v26 = vmax.f32 %v442_v12, 0.0  ;;  %v499_v48 = vmax.f32 %v497_v29, %v498_v39 }
 0x1b0   :  { %v502_v19 = vmax.f32 %v500_v5, %v501_v11  ;;  %v445_v20 = vadd.f32 %v841_v17, %v444_v18  ;;  %v471_v23 = vmax.f32 %v453_v16, 0.0  ;;  %v510_v30 = vrot.slane %v509_v15, 2 }
 0x1b1   :  { %v492_v36 = vmax.f32 %v490_v10, %v491_v24 }
 0x1b2   :  { %v503_v25 = vrot.slane %v502_v19, 2  ;;  %v469_v27 = vmax.f32 %v445_v20, 0.0  ;;  %v521_v31 = vmax.f32 %v470_v22, %v471_v23  ;;  %v511_v40 = vmax.f32 %v509_v15, %v510_v30 }
 0x1b3   :  { %v545_v45 = vsel %vm544_vm4, %v492_v36, %v543_v43 }
 0x1b4   :  { %v504_v32 = vmax.f32 %v502_v19, %v503_v25  ;;  %v514_v33 = vmax.f32 %v468_v26, %v469_v27  ;;  %v522_v35 = vrot.slane %v521_v31, 4  ;;  %v512_v49 = vrot.slane %v511_v40, 1 }
 0x1b5   :  { %v547_v53 = vsel %vm546_vm5, %v499_v48, %v545_v45 }
 0x1b6   :  { %v505_v37 = vrot.slane %v504_v32, 1  ;;  %v515_v17 = vrot.slane %v514_v33, 4  ;;  %v523_v41 = vmax.f32 %v521_v31, %v522_v35  ;;  %v513_v56 = vmax.f32 %v511_v40, %v512_v49 }
 0x1b8   :  { %v516_v42 = vmax.f32 %v514_v33, %v515_v17  ;;  %v524_v44 = vrot.slane %v523_v41, 2  ;;  %v506_v46 = vmax.f32 %v504_v32, %v505_v37 }
 0x1ba   :  { %v517_v47 = vrot.slane %v516_v42, 2  ;;  %v525_v50 = vmax.f32 %v523_v41, %v524_v44  ;;  %v549_v55 = vsel %vm548_vm6, %v506_v46, %v547_v53 }
 0x1bb   :  { %v551_v59 = vsel %vm550_vm7, %v513_v56, %v549_v55 }
 0x1bc   :  { %v518_v51 = vmax.f32 %v516_v42, %v517_v47  ;;  %v526_v52 = vrot.slane %v525_v50, 1 }
 0x1be   :  { %v519_v54 = vrot.slane %v518_v51, 1  ;;  %v527_v58 = vmax.f32 %v525_v50, %v526_v52 }
 0x1c0   :  { %v520_v57 = vmax.f32 %v518_v51, %v519_v54 }
 0x1c2   :  { %v553_v60 = vsel %vm552_vm8, %v520_v57, %v551_v59 }
 0x1c3   :  { %v555_v61 = vsel %vm554_vm9, %v527_v58, %v553_v60 }
 0x1c4   :  { %v557_v62 = vmax.f32 %v555_v61, 0.0 }
 0x1c6   :  { %558 = vst [vmem:[#allocation2] sm:$0xff] %v557_v62 }
 0x1c7   :  { %706 = shalt.err (!%p703_p4)
}
 0x1c8   :  { %568 = dma.vmem_to_hbm [thread:$0]  %s566_s9, 128, %s867_s5, [#allocation3]  }
 0x1c9   :  { %715 = dma.done.wait [#allocation3], 128  }
 0x1ca   :  { %716 = vsyncadd [#allocation3], 4294967168 }
 0x1cb   :  { %572 = vsyncpa [#allocation3], 1 }

</bundles_post_ra>
